<compile_context>
chip_gen: v7x
topology: tpu7x:2x2x1
jax: 0.10.0
libtpu: 0.0.40
codegen_flags: <defaults>
</compile_context>

<pallas_src>
import numpy as np
import jax
import jax.numpy as jnp
from jax.experimental import pallas as pl
from jax.experimental.pallas import tpu as pltpu


LANE = 128     # vreg lane width
MAX_LB = 512   # max lanes per grid step (group loop keeps vreg pressure bounded)


# ---------------- schedule construction (host-side numpy, matches PyTorch) ---
def clip_noise_schedule(alphas2, clip_value=0.001):
    alphas2 = np.concatenate([np.ones(1), alphas2], axis=0)
    alphas_step = alphas2[1:] / alphas2[:-1]
    alphas_step = np.clip(alphas_step, a_min=clip_value, a_max=1.0)
    alphas2 = np.cumprod(alphas_step, axis=0)
    return alphas2


def polynomial_schedule(timesteps: int, s=0.0001, power=3.0):
    steps = timesteps + 1
    x = np.linspace(0, steps, steps)
    alphas2 = (1 - np.power(x / steps, power)) ** 2
    alphas2 = clip_noise_schedule(alphas2, clip_value=0.001)
    precision = 1 - 2 * s
    alphas2 = precision * alphas2 + s
    return alphas2


def make_gamma_table(noise_schedule: str, timesteps: int, precision: float):
    splits = noise_schedule.split("_")
    assert len(splits) == 2
    power = float(splits[1])
    alphas2 = polynomial_schedule(timesteps, s=precision, power=power)
    sigmas2 = 1 - alphas2
    log_alphas2 = np.log(alphas2)
    log_sigmas2 = np.log(sigmas2)
    gamma = -(log_alphas2 - log_sigmas2)  # shape (timesteps + 1,)
    return np.asarray(gamma, dtype=np.float32)


def pack_gamma_table(gamma_np: np.ndarray, timesteps: int, lanes: int = MAX_LB):
    """One-time (construction-time) packing of the gamma table for the kernel.

    Sublane-pads the (timesteps+1,) table to a multiple of 8 rows and
    replicates it across `lanes` lanes so the kernel's select operand is a
    full vreg slab (zero in-kernel lane broadcasts). Padded rows are zero and
    never selected because t_int is clamped to [0, timesteps].
    """
    T1 = timesteps + 1
    assert gamma_np.shape == (T1,)
    Tp = 8 * ((T1 + 7) // 8)
    packed = np.zeros((Tp, lanes), dtype=np.float32)
    packed[:T1, :] = gamma_np[:, None]
    return jnp.asarray(packed)  # device-resident, built once ("register_buffer")


# ---------------- Pallas kernel ----------------------------------------------
def _make_lookup_kernel(timesteps: int, n_groups: int):
    def gamma_lookup_kernel(t_ref, gamma_ref, out_ref):
        # t_ref:     (1, LB)   f32  -- diffusion times, lane-dense
        # gamma_ref: (Tp, LB)  f32  -- lane-replicated lookup table (grid-resident)
        # out_ref:   (1, LB)   f32  -- lane-dense output
        LB = t_ref.shape[1]

        t = t_ref[...]                                               # (1, LB)
        # Clamp is a deliberate robustness deviation from torch (OOB t).
        t_int = jnp.clip(
            jnp.round(t * jnp.float32(timesteps)).astype(jnp.int32),
            0, timesteps)                                            # (1, LB)

        # Loop invariants hoisted once (JAX does not CSE broadcast_in_dim).
        t_int8 = jnp.broadcast_to(t_int, (8, LB))                    # (8, LB)
        iota8 = jax.lax.broadcasted_iota(jnp.int32, (8, LB), 0)      # (8, LB)

        # Gather as a short unrolled accumulation over sublane groups of 8:
        # keeps ~20 vregs live (vs 50+ for a monolithic (Tp, LB) mask), so
        # nothing spills at LB=512 on v5e/v6e/v7x. Pure VPU work per group.
        def body(g, acc8):
            g8 = g * 8
            rows = iota8 + g8                                        # (8, LB)
            grp = gamma_ref[pl.ds(pl.multiple_of(g8, 8), 8), :]      # (8, LB)
            return acc8 + jnp.where(rows == t_int8, grp, jnp.float32(0.0))

        acc8 = jax.lax.fori_loop(
            0, n_groups, body, jnp.zeros((8, LB), jnp.float32), unroll=True)

        # Exactly one non-zero term per lane -> a single sublane reduce
        # (one XLU op per 128 outputs) is an exact gather.
        out_ref[...] = jnp.sum(acc8, axis=0, keepdims=True)          # (1, LB)

    return gamma_lookup_kernel


def predefined_noise_schedule_forward(t, gamma_packed, timesteps: int):
    """t: any-shape float32 in [0, 1]; gamma_packed: output of pack_gamma_table.

    Returns gamma[round(t * timesteps)], same shape as t (float32).
    """
    t = jnp.asarray(t, jnp.float32)
    orig_shape = t.shape
    flat = t.reshape(-1)
    B = flat.shape[0]

    Tp, table_lanes = gamma_packed.shape
    assert Tp % 8 == 0 and Tp >= timesteps + 1
    n_groups = Tp // 8

    # Lane block for the batch axis: one vreg width minimum, capped at MAX_LB
    # lanes per grid step; multiple steps shard across v7x TensorCores.
    LB = min(table_lanes, LANE * pl.cdiv(B, LANE))
    Bp = LB * pl.cdiv(B, LB)

    # Lane-dense t row; skip the full-array pad copy when already aligned.
    if Bp == B:
        t_row = flat.reshape(1, Bp)
    else:
        # Padded lanes evaluate gamma[0] and are discarded below.
        t_row = jnp.pad(flat, (0, Bp - B)).reshape(1, Bp)

    kernel = _make_lookup_kernel(timesteps, n_groups)
    out_row = pl.pallas_call(
        kernel,
        out_shape=jax.ShapeDtypeStruct((1, Bp), jnp.float32),
        grid=(Bp // LB,),
        in_specs=[
            pl.BlockSpec((1, LB), lambda i: (0, i)),    # t tile (lane-dense)
            pl.BlockSpec((Tp, LB), lambda i: (0, 0)),   # gamma: grid-resident
        ],
        out_specs=pl.BlockSpec((1, LB), lambda i: (0, i)),
        compiler_params=pltpu.CompilerParams(
            dimension_semantics=("parallel",)),
    )(t_row, gamma_packed)

    if Bp == B:
        return out_row.reshape(orig_shape)
    return out_row[0, :B].reshape(orig_shape)


# ---------------- driver ------------------------------------------------------
if __name__ == "__main__":
    noise_schedule = "polynomial_2"
    timesteps = 100
    precision = 1e-4

    # "__init__" work: build + pack the table once (host numpy -> device).
    gamma_np = make_gamma_table(noise_schedule, timesteps, precision)   # (101,)
    gamma_packed = pack_gamma_table(gamma_np, timesteps)                # (104, 512)

    key = jax.random.PRNGKey(0)
    B = 8
    t = jax.random.uniform(key, (B, 1), dtype=jnp.float32)  # times in [0, 1)

    out = predefined_noise_schedule_forward(t, gamma_packed, timesteps)
    out = jax.block_until_ready(out)

    # Reference check (plain numpy), mirrors torch: gamma[round(t*T).long()]
    t_np = np.asarray(t, dtype=np.float32)
    t_int_ref = np.round(t_np * np.float32(timesteps)).astype(np.int64)  # (B, 1)
    ref = gamma_np[t_int_ref]                                            # (B, 1)
    assert out.shape == (B, 1)
    assert np.allclose(np.asarray(out), ref, rtol=1e-6, atol=1e-6)

    print("KERNEL_OK")
</pallas_src>

<mosaic_0001>
module attributes {stable_mosaic.version = 11 : i64} {
  func.func @gamma_lookup_kernel(%arg0: i32, %arg1: memref<1x128xf32, #tpu.memory_space<vmem>>, %arg2: memref<104x128xf32, #tpu.memory_space<vmem>>, %arg3: memref<1x128xf32, #tpu.memory_space<vmem>>) attributes {dimension_semantics = [#tpu.dimension_semantics<parallel>], iteration_bounds = array<i64: 1>, scalar_prefetch = 0 : i64, scratch_operands = 0 : i64, tpu.core_type = #tpu.core_type<tc>, window_params = [{transform_indices = @transform_0, window_bounds = array<i64: 1, 128>}, {transform_indices = @transform_1, window_bounds = array<i64: 104, 128>}, {transform_indices = @transform_2, window_bounds = array<i64: 1, 128>}]} {
    %c0 = arith.constant 0 : index
    %c0_0 = arith.constant 0 : index
    %0 = vector.load %arg1[%c0, %c0_0] : memref<1x128xf32, #tpu.memory_space<vmem>>, vector<1x128xf32>
    %cst = arith.constant 1.000000e+02 : f32
    %1 = vector.broadcast %cst : f32 to vector<1x128xf32>
    %2 = arith.mulf %0, %1 : vector<1x128xf32>
    %3 = math.roundeven %2 : vector<1x128xf32>
    %4 = arith.fptosi %3 : vector<1x128xf32> to vector<1x128xi32>
    %c0_i32 = arith.constant 0 : i32
    %c100_i32 = arith.constant 100 : i32
    %5 = vector.broadcast %c0_i32 : i32 to vector<1x128xi32>
    %6 = arith.maxsi %5, %4 : vector<1x128xi32>
    %7 = vector.broadcast %c100_i32 : i32 to vector<1x128xi32>
    %8 = arith.minsi %7, %6 : vector<1x128xi32>
    %9 = vector.shape_cast %8 : vector<1x128xi32> to vector<1x128xi32>
    %10 = vector.broadcast %9 : vector<1x128xi32> to vector<8x128xi32>
    %11 = tpu.iota {dimensions = array<i32: 0>} : vector<8x128xi32>
    %cst_1 = arith.constant 0.000000e+00 : f32
    %12 = vector.broadcast %cst_1 : f32 to vector<8x128xf32>
    %c0_i32_2 = arith.constant 0 : i32
    %c8_i32 = arith.constant 8 : i32
    %13 = arith.muli %c0_i32_2, %c8_i32 : i32
    %14 = vector.broadcast %13 : i32 to vector<8x128xi32>
    %15 = arith.addi %11, %14 : vector<8x128xi32>
    %16 = tpu.assume_multiple %13, 8 : i32
    %17 = arith.index_cast %16 : i32 to index
    %c0_3 = arith.constant 0 : index
    %18 = vector.load %arg2[%17, %c0_3] : memref<104x128xf32, #tpu.memory_space<vmem>>, vector<8x128xf32>
    %19 = arith.cmpi eq, %15, %10 : vector<8x128xi32>
    %cst_4 = arith.constant 0.000000e+00 : f32
    %20 = vector.broadcast %cst_4 : f32 to vector<8x128xf32>
    %21 = arith.select %19, %18, %20 : vector<8x128xi1>, vector<8x128xf32>
    %22 = arith.addf %12, %21 : vector<8x128xf32>
    %c1_i32 = arith.constant 1 : i32
    %c8_i32_5 = arith.constant 8 : i32
    %23 = arith.muli %c1_i32, %c8_i32_5 : i32
    %24 = vector.broadcast %23 : i32 to vector<8x128xi32>
    %25 = arith.addi %11, %24 : vector<8x128xi32>
    %26 = tpu.assume_multiple %23, 8 : i32
    %27 = arith.index_cast %26 : i32 to index
    %c0_6 = arith.constant 0 : index
    %28 = vector.load %arg2[%27, %c0_6] : memref<104x128xf32, #tpu.memory_space<vmem>>, vector<8x128xf32>
    %29 = arith.cmpi eq, %25, %10 : vector<8x128xi32>
    %cst_7 = arith.constant 0.000000e+00 : f32
    %30 = vector.broadcast %cst_7 : f32 to vector<8x128xf32>
    %31 = arith.select %29, %28, %30 : vector<8x128xi1>, vector<8x128xf32>
    %32 = arith.addf %22, %31 : vector<8x128xf32>
    %c2_i32 = arith.constant 2 : i32
    %c8_i32_8 = arith.constant 8 : i32
    %33 = arith.muli %c2_i32, %c8_i32_8 : i32
    %34 = vector.broadcast %33 : i32 to vector<8x128xi32>
    %35 = arith.addi %11, %34 : vector<8x128xi32>
    %36 = tpu.assume_multiple %33, 8 : i32
    %37 = arith.index_cast %36 : i32 to index
    %c0_9 = arith.constant 0 : index
    %38 = vector.load %arg2[%37, %c0_9] : memref<104x128xf32, #tpu.memory_space<vmem>>, vector<8x128xf32>
    %39 = arith.cmpi eq, %35, %10 : vector<8x128xi32>
    %cst_10 = arith.constant 0.000000e+00 : f32
    %40 = vector.broadcast %cst_10 : f32 to vector<8x128xf32>
    %41 = arith.select %39, %38, %40 : vector<8x128xi1>, vector<8x128xf32>
    %42 = arith.addf %32, %41 : vector<8x128xf32>
    %c3_i32 = arith.constant 3 : i32
    %c8_i32_11 = arith.constant 8 : i32
    %43 = arith.muli %c3_i32, %c8_i32_11 : i32
    %44 = vector.broadcast %43 : i32 to vector<8x128xi32>
    %45 = arith.addi %11, %44 : vector<8x128xi32>
    %46 = tpu.assume_multiple %43, 8 : i32
    %47 = arith.index_cast %46 : i32 to index
    %c0_12 = arith.constant 0 : index
    %48 = vector.load %arg2[%47, %c0_12] : memref<104x128xf32, #tpu.memory_space<vmem>>, vector<8x128xf32>
    %49 = arith.cmpi eq, %45, %10 : vector<8x128xi32>
    %cst_13 = arith.constant 0.000000e+00 : f32
    %50 = vector.broadcast %cst_13 : f32 to vector<8x128xf32>
    %51 = arith.select %49, %48, %50 : vector<8x128xi1>, vector<8x128xf32>
    %52 = arith.addf %42, %51 : vector<8x128xf32>
    %c4_i32 = arith.constant 4 : i32
    %c8_i32_14 = arith.constant 8 : i32
    %53 = arith.muli %c4_i32, %c8_i32_14 : i32
    %54 = vector.broadcast %53 : i32 to vector<8x128xi32>
    %55 = arith.addi %11, %54 : vector<8x128xi32>
    %56 = tpu.assume_multiple %53, 8 : i32
    %57 = arith.index_cast %56 : i32 to index
    %c0_15 = arith.constant 0 : index
    %58 = vector.load %arg2[%57, %c0_15] : memref<104x128xf32, #tpu.memory_space<vmem>>, vector<8x128xf32>
    %59 = arith.cmpi eq, %55, %10 : vector<8x128xi32>
    %cst_16 = arith.constant 0.000000e+00 : f32
    %60 = vector.broadcast %cst_16 : f32 to vector<8x128xf32>
    %61 = arith.select %59, %58, %60 : vector<8x128xi1>, vector<8x128xf32>
    %62 = arith.addf %52, %61 : vector<8x128xf32>
    %c5_i32 = arith.constant 5 : i32
    %c8_i32_17 = arith.constant 8 : i32
    %63 = arith.muli %c5_i32, %c8_i32_17 : i32
    %64 = vector.broadcast %63 : i32 to vector<8x128xi32>
    %65 = arith.addi %11, %64 : vector<8x128xi32>
    %66 = tpu.assume_multiple %63, 8 : i32
    %67 = arith.index_cast %66 : i32 to index
    %c0_18 = arith.constant 0 : index
    %68 = vector.load %arg2[%67, %c0_18] : memref<104x128xf32, #tpu.memory_space<vmem>>, vector<8x128xf32>
    %69 = arith.cmpi eq, %65, %10 : vector<8x128xi32>
    %cst_19 = arith.constant 0.000000e+00 : f32
    %70 = vector.broadcast %cst_19 : f32 to vector<8x128xf32>
    %71 = arith.select %69, %68, %70 : vector<8x128xi1>, vector<8x128xf32>
    %72 = arith.addf %62, %71 : vector<8x128xf32>
    %c6_i32 = arith.constant 6 : i32
    %c8_i32_20 = arith.constant 8 : i32
    %73 = arith.muli %c6_i32, %c8_i32_20 : i32
    %74 = vector.broadcast %73 : i32 to vector<8x128xi32>
    %75 = arith.addi %11, %74 : vector<8x128xi32>
    %76 = tpu.assume_multiple %73, 8 : i32
    %77 = arith.index_cast %76 : i32 to index
    %c0_21 = arith.constant 0 : index
    %78 = vector.load %arg2[%77, %c0_21] : memref<104x128xf32, #tpu.memory_space<vmem>>, vector<8x128xf32>
    %79 = arith.cmpi eq, %75, %10 : vector<8x128xi32>
    %cst_22 = arith.constant 0.000000e+00 : f32
    %80 = vector.broadcast %cst_22 : f32 to vector<8x128xf32>
    %81 = arith.select %79, %78, %80 : vector<8x128xi1>, vector<8x128xf32>
    %82 = arith.addf %72, %81 : vector<8x128xf32>
    %c7_i32 = arith.constant 7 : i32
    %c8_i32_23 = arith.constant 8 : i32
    %83 = arith.muli %c7_i32, %c8_i32_23 : i32
    %84 = vector.broadcast %83 : i32 to vector<8x128xi32>
    %85 = arith.addi %11, %84 : vector<8x128xi32>
    %86 = tpu.assume_multiple %83, 8 : i32
    %87 = arith.index_cast %86 : i32 to index
    %c0_24 = arith.constant 0 : index
    %88 = vector.load %arg2[%87, %c0_24] : memref<104x128xf32, #tpu.memory_space<vmem>>, vector<8x128xf32>
    %89 = arith.cmpi eq, %85, %10 : vector<8x128xi32>
    %cst_25 = arith.constant 0.000000e+00 : f32
    %90 = vector.broadcast %cst_25 : f32 to vector<8x128xf32>
    %91 = arith.select %89, %88, %90 : vector<8x128xi1>, vector<8x128xf32>
    %92 = arith.addf %82, %91 : vector<8x128xf32>
    %c8_i32_26 = arith.constant 8 : i32
    %c8_i32_27 = arith.constant 8 : i32
    %93 = arith.muli %c8_i32_26, %c8_i32_27 : i32
    %94 = vector.broadcast %93 : i32 to vector<8x128xi32>
    %95 = arith.addi %11, %94 : vector<8x128xi32>
    %96 = tpu.assume_multiple %93, 8 : i32
    %97 = arith.index_cast %96 : i32 to index
    %c0_28 = arith.constant 0 : index
    %98 = vector.load %arg2[%97, %c0_28] : memref<104x128xf32, #tpu.memory_space<vmem>>, vector<8x128xf32>
    %99 = arith.cmpi eq, %95, %10 : vector<8x128xi32>
    %cst_29 = arith.constant 0.000000e+00 : f32
    %100 = vector.broadcast %cst_29 : f32 to vector<8x128xf32>
    %101 = arith.select %99, %98, %100 : vector<8x128xi1>, vector<8x128xf32>
    %102 = arith.addf %92, %101 : vector<8x128xf32>
    %c9_i32 = arith.constant 9 : i32
    %c8_i32_30 = arith.constant 8 : i32
    %103 = arith.muli %c9_i32, %c8_i32_30 : i32
    %104 = vector.broadcast %103 : i32 to vector<8x128xi32>
    %105 = arith.addi %11, %104 : vector<8x128xi32>
    %106 = tpu.assume_multiple %103, 8 : i32
    %107 = arith.index_cast %106 : i32 to index
    %c0_31 = arith.constant 0 : index
    %108 = vector.load %arg2[%107, %c0_31] : memref<104x128xf32, #tpu.memory_space<vmem>>, vector<8x128xf32>
    %109 = arith.cmpi eq, %105, %10 : vector<8x128xi32>
    %cst_32 = arith.constant 0.000000e+00 : f32
    %110 = vector.broadcast %cst_32 : f32 to vector<8x128xf32>
    %111 = arith.select %109, %108, %110 : vector<8x128xi1>, vector<8x128xf32>
    %112 = arith.addf %102, %111 : vector<8x128xf32>
    %c10_i32 = arith.constant 10 : i32
    %c8_i32_33 = arith.constant 8 : i32
    %113 = arith.muli %c10_i32, %c8_i32_33 : i32
    %114 = vector.broadcast %113 : i32 to vector<8x128xi32>
    %115 = arith.addi %11, %114 : vector<8x128xi32>
    %116 = tpu.assume_multiple %113, 8 : i32
    %117 = arith.index_cast %116 : i32 to index
    %c0_34 = arith.constant 0 : index
    %118 = vector.load %arg2[%117, %c0_34] : memref<104x128xf32, #tpu.memory_space<vmem>>, vector<8x128xf32>
    %119 = arith.cmpi eq, %115, %10 : vector<8x128xi32>
    %cst_35 = arith.constant 0.000000e+00 : f32
    %120 = vector.broadcast %cst_35 : f32 to vector<8x128xf32>
    %121 = arith.select %119, %118, %120 : vector<8x128xi1>, vector<8x128xf32>
    %122 = arith.addf %112, %121 : vector<8x128xf32>
    %c11_i32 = arith.constant 11 : i32
    %c8_i32_36 = arith.constant 8 : i32
    %123 = arith.muli %c11_i32, %c8_i32_36 : i32
    %124 = vector.broadcast %123 : i32 to vector<8x128xi32>
    %125 = arith.addi %11, %124 : vector<8x128xi32>
    %126 = tpu.assume_multiple %123, 8 : i32
    %127 = arith.index_cast %126 : i32 to index
    %c0_37 = arith.constant 0 : index
    %128 = vector.load %arg2[%127, %c0_37] : memref<104x128xf32, #tpu.memory_space<vmem>>, vector<8x128xf32>
    %129 = arith.cmpi eq, %125, %10 : vector<8x128xi32>
    %cst_38 = arith.constant 0.000000e+00 : f32
    %130 = vector.broadcast %cst_38 : f32 to vector<8x128xf32>
    %131 = arith.select %129, %128, %130 : vector<8x128xi1>, vector<8x128xf32>
    %132 = arith.addf %122, %131 : vector<8x128xf32>
    %c12_i32 = arith.constant 12 : i32
    %c8_i32_39 = arith.constant 8 : i32
    %133 = arith.muli %c12_i32, %c8_i32_39 : i32
    %134 = vector.broadcast %133 : i32 to vector<8x128xi32>
    %135 = arith.addi %11, %134 : vector<8x128xi32>
    %136 = tpu.assume_multiple %133, 8 : i32
    %137 = arith.index_cast %136 : i32 to index
    %c0_40 = arith.constant 0 : index
    %138 = vector.load %arg2[%137, %c0_40] : memref<104x128xf32, #tpu.memory_space<vmem>>, vector<8x128xf32>
    %139 = arith.cmpi eq, %135, %10 : vector<8x128xi32>
    %cst_41 = arith.constant 0.000000e+00 : f32
    %140 = vector.broadcast %cst_41 : f32 to vector<8x128xf32>
    %141 = arith.select %139, %138, %140 : vector<8x128xi1>, vector<8x128xf32>
    %142 = arith.addf %132, %141 : vector<8x128xf32>
    %c13_i32 = arith.constant 13 : i32
    %cst_42 = arith.constant dense<0.000000e+00> : vector<128xf32>
    %143 = vector.multi_reduction <add>, %142, %cst_42 [0] : vector<8x128xf32> to vector<128xf32>
    %144 = vector.shape_cast %143 : vector<128xf32> to vector<1x128xf32>
    %c0_43 = arith.constant 0 : index
    %c0_44 = arith.constant 0 : index
    %145 = vector.load %arg3[%c0_43, %c0_44] : memref<1x128xf32, #tpu.memory_space<vmem>>, vector<1x128xf32>
    tpu.vector_store %arg3[%c0_43, %c0_44], %144 {strides = array<i32>} : memref<1x128xf32, #tpu.memory_space<vmem>>, vector<1x128xf32>,
    return
  }
  func.func @transform_0(%arg0: i32) -> (i32, i32) {
    %c0_i32 = arith.constant 0 : i32
    %c0_i32_0 = arith.constant 0 : i32
    return %c0_i32, %arg0 : i32, i32
  }
  func.func @transform_1(%arg0: i32) -> (i32, i32) {
    %c0_i32 = arith.constant 0 : i32
    %c0_i32_0 = arith.constant 0 : i32
    %c0_i32_1 = arith.constant 0 : i32
    return %c0_i32, %c0_i32_0 : i32, i32
  }
  func.func @transform_2(%arg0: i32) -> (i32, i32) {
    %c0_i32 = arith.constant 0 : i32
    %c0_i32_0 = arith.constant 0 : i32
    return %c0_i32, %arg0 : i32, i32
  }
}

</mosaic_0001>

<bundles_post_ra>
// kernel: tpu_custom_call.1
= control target key start
LH: loop header
LB: loop body
LE: loop exit
PB: predicated region body
PF: predicated region fallthrough
CT: control target
= control target key end

     0   :  { %7 = vsyncpa [#allocation3], 0  ;;  %s298_s0 = inlined_call_operand.hbm [shape: f32[1,128], index: 0, kind: input, shape index: {}]   ;;  %s299_s1 = inlined_call_operand.hbm [shape: f32[104,512], index: 1, kind: input, shape index: {}]   ;;  %s300_s2 = inlined_call_operand.hbm [shape: f32[1,128], index: 2, kind: output, shape index: {}]  }
   0x1   :  { %8 = vsyncpa [#allocation6], 0 }
   0x2   :  { %9 = vsyncpa [#allocation4], 0  ;;  %s231_s9 = smov [#allocation2]   ;;  %s232_s11 = smov [#allocation5]  }
   0x3   :  { %s16_s10 = sshll.u32 %s231_s9, 4  ;;  %s25_s12 = sshll.u32 %s232_s11, 4  ;;  %s17_s10 = int_to_ptr.vmem [resolvable:$true] %s16_s10  ;;  %s252_s12 = int_to_ptr.vmem [resolvable:$true] %s25_s12 }
   0x4   :  { %s159_s15 = scalar_lea.hbm %s298_s0, 16 }
   0x5   :  { %p160_p0 = scmp.ne.s32.totalorder %s298_s0, %s159_s15  ;;  %p163_p1 = scmp.lt.u32.totalorder %s159_s15, %s298_s0 }
   0x7   :  { %p165_p2 = pnand %p163_p1, %p160_p0 }
   0x9   :  { %168 = shalt.err (!%p165_p2)
}
   0xa   :  { %s169_s20 = scalar_lea.vmem %s17_s10, 16  ;;  %s173_s21 = scalar_lea.vmem %s17_s10, 32 }
   0xb   :  { %p170_p3 = scmp.ne.s32.totalorder %s17_s10, %s169_s20  ;;  %p174_p4 = scmp.lt.s32.totalorder %s17_s10, %s17_s10 }
   0xc   :  { %p175_p5 = scmp.lt.s32.totalorder %s173_s21, %s169_s20 }
   0xe   :  { %p176_p6 = por %p175_p5, %p174_p4 }
  0x10   :  { %p177_p7 = pnand %p176_p6, %p170_p3 }
  0x12   :  { %180 = shalt.err (!%p177_p7)
}
  0x13   :  { %19 = dma.hbm_to_vmem [thread:$0]  %s298_s0, 16, %s17_s10, [#allocation3]  }
  0x14   :  { %s181_s26 = scalar_lea.hbm %s299_s1, 1664  ;;  %s183_s3 = scalar_lea.hbm %s299_s1, 6656 }
  0x15   :  { %p182_p8 = scmp.ne.s32.totalorder %s299_s1, %s181_s26  ;;  %p184_p9 = scmp.lt.u32.totalorder %s183_s3, %s181_s26 }
  0x16   :  { %p185_p10 = scmp.lt.u32.totalorder %s181_s26, %s299_s1 }
  0x18   :  { %p186_p11 = por %p185_p10, %p184_p9 }
  0x1a   :  { %p187_p12 = pnand %p186_p11, %p182_p8 }
  0x1c   :  { %190 = shalt.err (!%p187_p12)
}
  0x1d   :  { %s191_s0 = scalar_lea.vmem %s252_s12, 1664  ;;  %p196_p0 = scmp.lt.s32.totalorder %s252_s12, %s252_s12 }
  0x1e   :  { %p192_p13 = scmp.ne.s32.totalorder %s252_s12, %s191_s0  ;;  %p197_p1 = scmp.lt.s32.totalorder %s191_s0, %s191_s0 }
  0x20   :  { %p198_p2 = por %p197_p1, %p196_p0 }
  0x22   :  { %p199_p3 = pnand %p198_p2, %p192_p13 }
  0x24   :  { %202 = shalt.err (!%p199_p3)
}
  0x25   :  { %s233_s6 = smov 512   ;;  %s234_s7 = smov 128  }
  0x26   :  { %s235_s8 = smov 8  }
  0x27   :  { %31 = dma.hbm_to_vmem [thread:$0]  %s299_s1, 1664, %s252_s12, [#allocation6], %s233_s6, %s234_s7, %s235_s8  }
  0x28   :  { %225 = dma.done.wait [#allocation3], 16  }
  0x29   :  { %226 = vsyncadd [#allocation3], 4294967280 }
  0x2a   :  { %227 = dma.done.wait [#allocation6], 1664  }
  0x2b   :  { %228 = vsyncadd [#allocation6], 4294965632  ;;  %v45_v0 = vlaneseq  ;;  %v38_v1 = vld [vmem:[#allocation2] sm:$0x1]  ;;  %v51_v12 = vld [vmem:[#allocation5] sm:$0xff]  ;;  %s236_s1 = smov [#allocation7]  }
  0x2c   :  { %v39_v2 = vmul.f32 100.0, %v38_v1  ;;  %v57_v13 = vld [vmem:[#allocation5 + $0x8] sm:$0xff]  ;;  %v63_v14 = vld [vmem:[#allocation5 + $0x10] sm:$0xff]  ;;  %v69_v17 = vld [vmem:[#allocation5 + $0x18] sm:$0xff]  ;;  %s140_s11 = sshll.u32 %s236_s1, 4  ;;  %s141_s11 = int_to_ptr.vmem [resolvable:$true] %s140_s11 }
  0x2d   :  { %v46_v3 = vshrl.u32 %v45_v0, 7  ;;  %v75_v22 = vld [vmem:[#allocation5 + $0x20] sm:$0xff]  ;;  %v81_v26 = vld [vmem:[#allocation5 + $0x28] sm:$0xff]  ;;  %v87_v30 = vld [vmem:[#allocation5 + $0x30] sm:$0xff]  ;;  %s203_s12 = scalar_lea.vmem %s141_s11, 16  ;;  %s207_s13 = scalar_lea.vmem %s141_s11, 32 }
  0x2e   :  { %v152_v4 = vcvt.f32.s32 %v39_v2  ;;  %v93_v34 = vld [vmem:[#allocation5 + $0x38] sm:$0xff]  ;;  %v99_v38 = vld [vmem:[#allocation5 + $0x40] sm:$0xff]  ;;  %v105_v42 = vld [vmem:[#allocation5 + $0x48] sm:$0xff]  ;;  %p204_p4 = scmp.ne.s32.totalorder %s141_s11, %s203_s12  ;;  %p208_p5 = scmp.lt.s32.totalorder %s141_s11, %s141_s11 }
  0x2f   :  { %v47_v5 = vsub.s32 0, %v46_v3  ;;  %v55_v7 = vadd.s32 8, %v46_v3  ;;  %v61_v8 = vadd.s32 16, %v46_v3  ;;  %v67_v9 = vadd.s32 24, %v46_v3  ;;  %v111_v46 = vld [vmem:[#allocation5 + $0x50] sm:$0xff]  ;;  %v117_v50 = vld [vmem:[#allocation5 + $0x58] sm:$0xff]  ;;  %p209_p6 = scmp.lt.s32.totalorder %s207_s13, %s203_s12 }
  0x30   :  { %vm41_vm0 = vcmp.gt.s32.totalorder %v152_v4, 0  ;;  %v73_v15 = vadd.s32 32, %v46_v3  ;;  %v79_v16 = vadd.s32 40, %v46_v3  ;;  %v85_v23 = vadd.s32 48, %v46_v3  ;;  %v123_v53 = vld [vmem:[#allocation5 + $0x60] sm:$0xff] }
  0x31   :  { %v42_v6 = vsel %vm41_vm0, %v152_v4, 0  ;;  %v91_v27 = vadd.s32 56, %v46_v3  ;;  %v97_v31 = vadd.s32 64, %v46_v3  ;;  %v103_v35 = vadd.s32 72, %v46_v3  ;;  %p210_p7 = por %p209_p6, %p208_p5 }
  0x32   :  { %vm43_vm1 = vcmp.lt.s32.totalorder %v42_v6, 100  ;;  %v109_v39 = vadd.s32 80, %v46_v3  ;;  %v115_v43 = vadd.s32 88, %v46_v3  ;;  %v121_v47 = vadd.s32 96, %v46_v3 }
  0x33   :  { %v44_v10 = vsel %vm43_vm1, %v42_v6, 100  ;;  %p211_p8 = pnand %p210_p7, %p204_p4 }
  0x34   :  { %v48_v11 = vrot.slane %v44_v10, %v47_v5 }
  0x36   :  { %vm52_vm2 = vcmp.eq.s32.totalorder %v46_v3, %v48_v11  ;;  %vm58_vm3 = vcmp.eq.s32.totalorder %v55_v7, %v48_v11  ;;  %vm64_vm4 = vcmp.eq.s32.totalorder %v61_v8, %v48_v11  ;;  %vm70_vm5 = vcmp.eq.s32.totalorder %v67_v9, %v48_v11 }
  0x37   :  { %v53_v18 = vsel %vm52_vm2, %v51_v12, 0.0  ;;  %v59_v19 = vsel %vm58_vm3, %v57_v13, 0.0  ;;  %v65_v20 = vsel %vm64_vm4, %v63_v14, 0.0  ;;  %vm76_vm6 = vcmp.eq.s32.totalorder %v73_v15, %v48_v11 }
  0x38   :  { %v60_v21 = vadd.f32 %v59_v19, %v53_v18  ;;  %v71_v24 = vsel %vm70_vm5, %v69_v17, 0.0  ;;  %vm82_vm7 = vcmp.eq.s32.totalorder %v79_v16, %v48_v11  ;;  %v77_v28 = vsel %vm76_vm6, %v75_v22, 0.0 }
  0x39   :  { %vm88_vm8 = vcmp.eq.s32.totalorder %v85_v23, %v48_v11  ;;  %v83_v32 = vsel %vm82_vm7, %v81_v26, 0.0  ;;  %vm94_vm9 = vcmp.eq.s32.totalorder %v91_v27, %v48_v11  ;;  %vm100_vm10 = vcmp.eq.s32.totalorder %v97_v31, %v48_v11 }
  0x3a   :  { %v66_v25 = vadd.f32 %v65_v20, %v60_v21  ;;  %v89_v36 = vsel %vm88_vm8, %v87_v30, 0.0  ;;  %v95_v40 = vsel %vm94_vm9, %v93_v34, 0.0  ;;  %vm106_vm11 = vcmp.eq.s32.totalorder %v103_v35, %v48_v11 }
  0x3b   :  { %v101_v44 = vsel %vm100_vm10, %v99_v38, 0.0  ;;  %vm112_vm12 = vcmp.eq.s32.totalorder %v109_v39, %v48_v11  ;;  %v107_v48 = vsel %vm106_vm11, %v105_v42, 0.0  ;;  %vm118_vm13 = vcmp.eq.s32.totalorder %v115_v43, %v48_v11 }
  0x3c   :  { %v72_v29 = vadd.f32 %v71_v24, %v66_v25  ;;  %v113_v51 = vsel %vm112_vm12, %v111_v46, 0.0  ;;  %vm124_vm14 = vcmp.eq.s32.totalorder %v121_v47, %v48_v11  ;;  %v119_v54 = vsel %vm118_vm13, %v117_v50, 0.0 }
  0x3d   :  { %v125_v56 = vsel %vm124_vm14, %v123_v53, 0.0 }
  0x3e   :  { %v78_v33 = vadd.f32 %v77_v28, %v72_v29 }
  0x40   :  { %v84_v37 = vadd.f32 %v83_v32, %v78_v33 }
  0x42   :  { %v90_v41 = vadd.f32 %v89_v36, %v84_v37 }
  0x44   :  { %v96_v45 = vadd.f32 %v95_v40, %v90_v41 }
  0x46   :  { %v102_v49 = vadd.f32 %v101_v44, %v96_v45 }
  0x48   :  { %v108_v52 = vadd.f32 %v107_v48, %v102_v49 }
  0x4a   :  { %v114_v55 = vadd.f32 %v113_v51, %v108_v52 }
  0x4c   :  { %v120_v57 = vadd.f32 %v119_v54, %v114_v55 }
  0x4e   :  { %v126_v58 = vadd.f32 %v125_v56, %v120_v57 }
  0x50   :  { %v127_v59 = vrot.slane %v126_v58, 4 }
  0x52   :  { %v128_v60 = vadd.f32 %v127_v59, %v126_v58 }
  0x54   :  { %v129_v61 = vrot.slane %v128_v60, 2 }
  0x56   :  { %v130_v62 = vadd.f32 %v129_v61, %v128_v60 }
  0x58   :  { %v131_v63 = vrot.slane %v130_v62, 1 }
  0x5a   :  { %v132_v0 = vadd.f32 %v131_v63, %v130_v62 }
  0x5c   :  { %133 = vst [vmem:[#allocation7] sm:$0x1] %v132_v0 }
  0x5d   :  { %214 = shalt.err (!%p211_p8)
}
  0x5e   :  { %s215_s16 = scalar_lea.hbm %s300_s2, 16 }
  0x5f   :  { %p216_p9 = scmp.ne.s32.totalorder %s300_s2, %s215_s16  ;;  %p219_p10 = scmp.lt.u32.totalorder %s215_s16, %s300_s2 }
  0x61   :  { %p221_p11 = pnand %p219_p10, %p216_p9 }
  0x63   :  { %224 = shalt.err (!%p221_p11)
}
  0x64   :  { %143 = dma.vmem_to_hbm [thread:$0]  %s141_s11, 16, %s300_s2, [#allocation4]  }
  0x65   :  { %229 = dma.done.wait [#allocation4], 16  }
  0x66   :  { %230 = vsyncadd [#allocation4], 4294967280 }
  0x67   :  { %147 = vsyncpa [#allocation3], 1 }
  0x68   :  { %148 = vsyncpa [#allocation6], 1 }
  0x69   :  { %149 = vsyncpa [#allocation4], 1 }

</bundles_post_ra>
